<compile_context>
chip_gen: v5e
topology: v5e:2x2
jax: 0.10.0
libtpu: 0.0.40
codegen_flags: <defaults>
</compile_context>

<pallas_src>
import functools

import jax
import jax.numpy as jnp
from jax.experimental import pallas as pl
from jax.experimental.pallas import tpu as pltpu

# Static problem configuration (matches the PyTorch module).
C_IN, C_OUT, KH, KW = 3, 6, 3, 3
STRIDE, PAD = 1, 0


def _conv2d_kernel(x_ref, w_ref, b_ref, o_ref, *, h, w, h_out, w_out):
    """One batch element per grid step.

    x_ref: (1, C_IN, H*W)          flattened NCHW image, lanes = spatial
    w_ref: (C_OUT, KH*KW*C_IN)     taps ordered (kh, kw, c)
    b_ref: (C_OUT, 1)
    o_ref: (1, C_OUT, H_out*W_out) lane-dense output slab
    """
    hw = h * w
    x = x_ref[0]  # (C_IN, H*W), f32

    # Build the im2col slab once: row (kh, kw, c) at anchor position
    # p = i*W + j holds x[c, i+kh, j+kw].  Each tap is a lane roll of the
    # flattened image; the wrap-around only lands in the unused right/bottom
    # border, never at a valid output anchor.
    taps = []
    for kh in range(KH):
        for kw in range(KW):
            d = kh * w + kw
            taps.append(x if d == 0 else pltpu.roll(x, shift=hw - d, axis=1))
    im2col = jnp.concatenate(taps, axis=0)  # (KH*KW*C_IN, H*W)

    # One fused MXU matmul, f32 accumulation, bias folded in.
    acc = jnp.dot(w_ref[...], im2col, preferred_element_type=jnp.float32)
    acc = acc + b_ref[...]  # (C_OUT, 1) broadcast over lanes

    # Compact input-strided rows (stride W) into the dense output layout
    # (stride W_out): 14 small lane-offset stores; the HBM writeback of the
    # (C_OUT, 196) block stays dense.
    for i in range(h_out):
        o_ref[0, :, i * w_out:(i + 1) * w_out] = (
            acc[:, i * w:i * w + w_out].astype(o_ref.dtype))


def conv2d_pallas(x_nchw, weight_oihw, bias):
    """Forward pass equivalent to torch.nn.Conv2d(3, 6, 3, stride=1, padding=0).

    x_nchw:      (N, C_IN, H, W)  float32
    weight_oihw: (C_OUT, C_IN, KH, KW)
    bias:        (C_OUT,)
    returns:     (N, C_OUT, H-2, W-2)  float32  (NCHW, like PyTorch)
    """
    n, c_in, h, w = x_nchw.shape
    assert c_in == C_IN
    h_out = (h + 2 * PAD - KH) // STRIDE + 1
    w_out = (w + 2 * PAD - KW) // STRIDE + 1
    hw = h * w
    p_out = h_out * w_out

    # Wrapper glue: contiguous (free) reshapes for activations/outputs; only
    # the 648-byte weight is re-laid-out once to (C_OUT, KH*KW*C_IN).
    x_flat = x_nchw.reshape(n, C_IN, hw)
    w_mat = jnp.transpose(weight_oihw, (0, 2, 3, 1)).reshape(C_OUT, KH * KW * C_IN)
    b_col = bias.reshape(C_OUT, 1)

    kernel = functools.partial(_conv2d_kernel, h=h, w=w, h_out=h_out, w_out=w_out)

    out_flat = pl.pallas_call(
        kernel,
        out_shape=jax.ShapeDtypeStruct((n, C_OUT, p_out), x_nchw.dtype),
        grid_spec=pltpu.PrefetchScalarGridSpec(
            num_scalar_prefetch=0,
            grid=(n,),
            in_specs=[
                pl.BlockSpec((1, C_IN, hw), lambda b: (b, 0, 0)),
                pl.BlockSpec((C_OUT, KH * KW * C_IN), lambda b: (0, 0)),
                pl.BlockSpec((C_OUT, 1), lambda b: (0, 0)),
            ],
            out_specs=pl.BlockSpec((1, C_OUT, p_out), lambda b: (b, 0, 0)),
        ),
        compiler_params=pltpu.CompilerParams(
            dimension_semantics=("parallel",)),
    )(x_flat, w_mat, b_col)

    # Free (contiguous) reshape back to PyTorch's NCHW output shape.
    return out_flat.reshape(n, C_OUT, h_out, w_out)


if __name__ == "__main__":
    key = jax.random.PRNGKey(0)
    kx, kw, kb = jax.random.split(key, 3)

    # Small shapes consistent with the module: N=2, C_in=3, H=W=16.
    x = jax.random.normal(kx, (2, C_IN, 16, 16), dtype=jnp.float32)

    # Deterministic parameter init (Kaiming-uniform-style bounds like PyTorch).
    fan_in = C_IN * KH * KW
    bound = 1.0 / (fan_in ** 0.5)
    weight = jax.random.uniform(kw, (C_OUT, C_IN, KH, KW),
                                minval=-bound, maxval=bound, dtype=jnp.float32)
    bias = jax.random.uniform(kb, (C_OUT,),
                              minval=-bound, maxval=bound, dtype=jnp.float32)

    out = conv2d_pallas(x, weight, bias)
    jax.block_until_ready(out)

    # Sanity check against the XLA reference convolution.
    ref = jax.lax.conv_general_dilated(
        x, weight, window_strides=(STRIDE, STRIDE), padding="VALID",
        dimension_numbers=("NCHW", "OIHW", "NCHW"),
    ) + bias.reshape(1, C_OUT, 1, 1)
    assert out.shape == (2, C_OUT, 14, 14)
    assert jnp.max(jnp.abs(out - ref)) < 1e-4

    print("KERNEL_OK")
</pallas_src>

<mosaic_0001>
module attributes {stable_mosaic.version = 11 : i64} {
  func.func @_conv2d_kernel(%arg0: i32, %arg1: memref<1x3x256xf32, #tpu.memory_space<vmem>>, %arg2: memref<6x27xf32, #tpu.memory_space<vmem>>, %arg3: memref<6x1xf32, #tpu.memory_space<vmem>>, %arg4: memref<1x6x196xf32, #tpu.memory_space<vmem>>) attributes {dimension_semantics = [#tpu.dimension_semantics<parallel>], iteration_bounds = array<i64: 2>, scalar_prefetch = 0 : i64, scratch_operands = 0 : i64, tpu.core_type = #tpu.core_type<tc>, window_params = [{transform_indices = @transform_0, window_bounds = array<i64: 1, 3, 256>}, {pipeline_mode = #tpu.pipeline_mode<synchronous>, transform_indices = @transform_1, window_bounds = array<i64: 6, 27>}, {pipeline_mode = #tpu.pipeline_mode<synchronous>, transform_indices = @transform_2, window_bounds = array<i64: 6, 1>}, {transform_indices = @transform_3, window_bounds = array<i64: 1, 6, 196>}]} {
    %c0 = arith.constant 0 : index
    %c0_0 = arith.constant 0 : index
    %c0_1 = arith.constant 0 : index
    %0 = vector.load %arg1[%c0, %c0_0, %c0_1] : memref<1x3x256xf32, #tpu.memory_space<vmem>>, vector<1x3x256xf32>
    %1 = vector.shape_cast %0 : vector<1x3x256xf32> to vector<3x256xf32>
    %c255_i32 = arith.constant 255 : i32
    %2 = tpu.dynamic_rotate %1 by %c255_i32 dim 1 : vector<3x256xf32>, i32 -> vector<3x256xf32>
    %c254_i32 = arith.constant 254 : i32
    %3 = tpu.dynamic_rotate %1 by %c254_i32 dim 1 : vector<3x256xf32>, i32 -> vector<3x256xf32>
    %c240_i32 = arith.constant 240 : i32
    %4 = tpu.dynamic_rotate %1 by %c240_i32 dim 1 : vector<3x256xf32>, i32 -> vector<3x256xf32>
    %c239_i32 = arith.constant 239 : i32
    %5 = tpu.dynamic_rotate %1 by %c239_i32 dim 1 : vector<3x256xf32>, i32 -> vector<3x256xf32>
    %c238_i32 = arith.constant 238 : i32
    %6 = tpu.dynamic_rotate %1 by %c238_i32 dim 1 : vector<3x256xf32>, i32 -> vector<3x256xf32>
    %c224_i32 = arith.constant 224 : i32
    %7 = tpu.dynamic_rotate %1 by %c224_i32 dim 1 : vector<3x256xf32>, i32 -> vector<3x256xf32>
    %c223_i32 = arith.constant 223 : i32
    %8 = tpu.dynamic_rotate %1 by %c223_i32 dim 1 : vector<3x256xf32>, i32 -> vector<3x256xf32>
    %c222_i32 = arith.constant 222 : i32
    %9 = tpu.dynamic_rotate %1 by %c222_i32 dim 1 : vector<3x256xf32>, i32 -> vector<3x256xf32>
    %10 = tpu.concatenate %1, %2, %3, %4, %5, %6, %7, %8, %9 in 0 : vector<3x256xf32>, vector<3x256xf32>, vector<3x256xf32>, vector<3x256xf32>, vector<3x256xf32>, vector<3x256xf32>, vector<3x256xf32>, vector<3x256xf32>, vector<3x256xf32> -> vector<27x256xf32>
    %c0_2 = arith.constant 0 : index
    %c0_3 = arith.constant 0 : index
    %11 = vector.load %arg2[%c0_2, %c0_3] : memref<6x27xf32, #tpu.memory_space<vmem>>, vector<6x27xf32>
    %cst = arith.constant dense<0.000000e+00> : vector<6x256xf32>
    %12 = tpu.matmul %11, %10, %cst {dimension_numbers = #tpu.dot_dimension_numbers<[1], [0], [0], [1], [0, 0, 1, 1], [], []>} : vector<6x27xf32>, vector<27x256xf32>, vector<6x256xf32> -> vector<6x256xf32>
    %c0_4 = arith.constant 0 : index
    %c0_5 = arith.constant 0 : index
    %13 = vector.load %arg3[%c0_4, %c0_5] : memref<6x1xf32, #tpu.memory_space<vmem>>, vector<6x1xf32>
    %14 = vector.broadcast %13 : vector<6x1xf32> to vector<6x256xf32>
    %15 = arith.addf %12, %14 : vector<6x256xf32>
    %16 = vector.extract_strided_slice %15 {offsets = [0, 0], sizes = [6, 14], strides = [1, 1]} : vector<6x256xf32> to vector<6x14xf32>
    %c0_6 = arith.constant 0 : index
    %c0_7 = arith.constant 0 : index
    %c0_8 = arith.constant 0 : index
    %17 = vector.load %arg4[%c0_6, %c0_7, %c0_8] : memref<1x6x196xf32, #tpu.memory_space<vmem>>, vector<1x6x14xf32>
    %18 = vector.shape_cast %17 : vector<1x6x14xf32> to vector<6x14xf32>
    %19 = vector.shape_cast %16 : vector<6x14xf32> to vector<1x6x14xf32>
    tpu.vector_store %arg4[%c0_6, %c0_7, %c0_8], %19 {strides = array<i32>} : memref<1x6x196xf32, #tpu.memory_space<vmem>>, vector<1x6x14xf32>,
    %20 = vector.extract_strided_slice %15 {offsets = [0, 16], sizes = [6, 14], strides = [1, 1]} : vector<6x256xf32> to vector<6x14xf32>
    %c0_9 = arith.constant 0 : index
    %c0_10 = arith.constant 0 : index
    %c14 = arith.constant 14 : index
    %21 = vector.load %arg4[%c0_9, %c0_10, %c14] : memref<1x6x196xf32, #tpu.memory_space<vmem>>, vector<1x6x14xf32>
    %22 = vector.shape_cast %21 : vector<1x6x14xf32> to vector<6x14xf32>
    %23 = vector.shape_cast %20 : vector<6x14xf32> to vector<1x6x14xf32>
    tpu.vector_store %arg4[%c0_9, %c0_10, %c14], %23 {strides = array<i32>} : memref<1x6x196xf32, #tpu.memory_space<vmem>>, vector<1x6x14xf32>,
    %24 = vector.extract_strided_slice %15 {offsets = [0, 32], sizes = [6, 14], strides = [1, 1]} : vector<6x256xf32> to vector<6x14xf32>
    %c0_11 = arith.constant 0 : index
    %c0_12 = arith.constant 0 : index
    %c28 = arith.constant 28 : index
    %25 = vector.load %arg4[%c0_11, %c0_12, %c28] : memref<1x6x196xf32, #tpu.memory_space<vmem>>, vector<1x6x14xf32>
    %26 = vector.shape_cast %25 : vector<1x6x14xf32> to vector<6x14xf32>
    %27 = vector.shape_cast %24 : vector<6x14xf32> to vector<1x6x14xf32>
    tpu.vector_store %arg4[%c0_11, %c0_12, %c28], %27 {strides = array<i32>} : memref<1x6x196xf32, #tpu.memory_space<vmem>>, vector<1x6x14xf32>,
    %28 = vector.extract_strided_slice %15 {offsets = [0, 48], sizes = [6, 14], strides = [1, 1]} : vector<6x256xf32> to vector<6x14xf32>
    %c0_13 = arith.constant 0 : index
    %c0_14 = arith.constant 0 : index
    %c42 = arith.constant 42 : index
    %29 = vector.load %arg4[%c0_13, %c0_14, %c42] : memref<1x6x196xf32, #tpu.memory_space<vmem>>, vector<1x6x14xf32>
    %30 = vector.shape_cast %29 : vector<1x6x14xf32> to vector<6x14xf32>
    %31 = vector.shape_cast %28 : vector<6x14xf32> to vector<1x6x14xf32>
    tpu.vector_store %arg4[%c0_13, %c0_14, %c42], %31 {strides = array<i32>} : memref<1x6x196xf32, #tpu.memory_space<vmem>>, vector<1x6x14xf32>,
    %32 = vector.extract_strided_slice %15 {offsets = [0, 64], sizes = [6, 14], strides = [1, 1]} : vector<6x256xf32> to vector<6x14xf32>
    %c0_15 = arith.constant 0 : index
    %c0_16 = arith.constant 0 : index
    %c56 = arith.constant 56 : index
    %33 = vector.load %arg4[%c0_15, %c0_16, %c56] : memref<1x6x196xf32, #tpu.memory_space<vmem>>, vector<1x6x14xf32>
    %34 = vector.shape_cast %33 : vector<1x6x14xf32> to vector<6x14xf32>
    %35 = vector.shape_cast %32 : vector<6x14xf32> to vector<1x6x14xf32>
    tpu.vector_store %arg4[%c0_15, %c0_16, %c56], %35 {strides = array<i32>} : memref<1x6x196xf32, #tpu.memory_space<vmem>>, vector<1x6x14xf32>,
    %36 = vector.extract_strided_slice %15 {offsets = [0, 80], sizes = [6, 14], strides = [1, 1]} : vector<6x256xf32> to vector<6x14xf32>
    %c0_17 = arith.constant 0 : index
    %c0_18 = arith.constant 0 : index
    %c70 = arith.constant 70 : index
    %37 = vector.load %arg4[%c0_17, %c0_18, %c70] : memref<1x6x196xf32, #tpu.memory_space<vmem>>, vector<1x6x14xf32>
    %38 = vector.shape_cast %37 : vector<1x6x14xf32> to vector<6x14xf32>
    %39 = vector.shape_cast %36 : vector<6x14xf32> to vector<1x6x14xf32>
    tpu.vector_store %arg4[%c0_17, %c0_18, %c70], %39 {strides = array<i32>} : memref<1x6x196xf32, #tpu.memory_space<vmem>>, vector<1x6x14xf32>,
    %40 = vector.extract_strided_slice %15 {offsets = [0, 96], sizes = [6, 14], strides = [1, 1]} : vector<6x256xf32> to vector<6x14xf32>
    %c0_19 = arith.constant 0 : index
    %c0_20 = arith.constant 0 : index
    %c84 = arith.constant 84 : index
    %41 = vector.load %arg4[%c0_19, %c0_20, %c84] : memref<1x6x196xf32, #tpu.memory_space<vmem>>, vector<1x6x14xf32>
    %42 = vector.shape_cast %41 : vector<1x6x14xf32> to vector<6x14xf32>
    %43 = vector.shape_cast %40 : vector<6x14xf32> to vector<1x6x14xf32>
    tpu.vector_store %arg4[%c0_19, %c0_20, %c84], %43 {strides = array<i32>} : memref<1x6x196xf32, #tpu.memory_space<vmem>>, vector<1x6x14xf32>,
    %44 = vector.extract_strided_slice %15 {offsets = [0, 112], sizes = [6, 14], strides = [1, 1]} : vector<6x256xf32> to vector<6x14xf32>
    %c0_21 = arith.constant 0 : index
    %c0_22 = arith.constant 0 : index
    %c98 = arith.constant 98 : index
    %45 = vector.load %arg4[%c0_21, %c0_22, %c98] : memref<1x6x196xf32, #tpu.memory_space<vmem>>, vector<1x6x14xf32>
    %46 = vector.shape_cast %45 : vector<1x6x14xf32> to vector<6x14xf32>
    %47 = vector.shape_cast %44 : vector<6x14xf32> to vector<1x6x14xf32>
    tpu.vector_store %arg4[%c0_21, %c0_22, %c98], %47 {strides = array<i32>} : memref<1x6x196xf32, #tpu.memory_space<vmem>>, vector<1x6x14xf32>,
    %48 = vector.extract_strided_slice %15 {offsets = [0, 128], sizes = [6, 14], strides = [1, 1]} : vector<6x256xf32> to vector<6x14xf32>
    %c0_23 = arith.constant 0 : index
    %c0_24 = arith.constant 0 : index
    %c112 = arith.constant 112 : index
    %49 = vector.load %arg4[%c0_23, %c0_24, %c112] : memref<1x6x196xf32, #tpu.memory_space<vmem>>, vector<1x6x14xf32>
    %50 = vector.shape_cast %49 : vector<1x6x14xf32> to vector<6x14xf32>
    %51 = vector.shape_cast %48 : vector<6x14xf32> to vector<1x6x14xf32>
    tpu.vector_store %arg4[%c0_23, %c0_24, %c112], %51 {strides = array<i32>} : memref<1x6x196xf32, #tpu.memory_space<vmem>>, vector<1x6x14xf32>,
    %52 = vector.extract_strided_slice %15 {offsets = [0, 144], sizes = [6, 14], strides = [1, 1]} : vector<6x256xf32> to vector<6x14xf32>
    %c0_25 = arith.constant 0 : index
    %c0_26 = arith.constant 0 : index
    %c126 = arith.constant 126 : index
    %53 = vector.load %arg4[%c0_25, %c0_26, %c126] : memref<1x6x196xf32, #tpu.memory_space<vmem>>, vector<1x6x14xf32>
    %54 = vector.shape_cast %53 : vector<1x6x14xf32> to vector<6x14xf32>
    %55 = vector.shape_cast %52 : vector<6x14xf32> to vector<1x6x14xf32>
    tpu.vector_store %arg4[%c0_25, %c0_26, %c126], %55 {strides = array<i32>} : memref<1x6x196xf32, #tpu.memory_space<vmem>>, vector<1x6x14xf32>,
    %56 = vector.extract_strided_slice %15 {offsets = [0, 160], sizes = [6, 14], strides = [1, 1]} : vector<6x256xf32> to vector<6x14xf32>
    %c0_27 = arith.constant 0 : index
    %c0_28 = arith.constant 0 : index
    %c140 = arith.constant 140 : index
    %57 = vector.load %arg4[%c0_27, %c0_28, %c140] : memref<1x6x196xf32, #tpu.memory_space<vmem>>, vector<1x6x14xf32>
    %58 = vector.shape_cast %57 : vector<1x6x14xf32> to vector<6x14xf32>
    %59 = vector.shape_cast %56 : vector<6x14xf32> to vector<1x6x14xf32>
    tpu.vector_store %arg4[%c0_27, %c0_28, %c140], %59 {strides = array<i32>} : memref<1x6x196xf32, #tpu.memory_space<vmem>>, vector<1x6x14xf32>,
    %60 = vector.extract_strided_slice %15 {offsets = [0, 176], sizes = [6, 14], strides = [1, 1]} : vector<6x256xf32> to vector<6x14xf32>
    %c0_29 = arith.constant 0 : index
    %c0_30 = arith.constant 0 : index
    %c154 = arith.constant 154 : index
    %61 = vector.load %arg4[%c0_29, %c0_30, %c154] : memref<1x6x196xf32, #tpu.memory_space<vmem>>, vector<1x6x14xf32>
    %62 = vector.shape_cast %61 : vector<1x6x14xf32> to vector<6x14xf32>
    %63 = vector.shape_cast %60 : vector<6x14xf32> to vector<1x6x14xf32>
    tpu.vector_store %arg4[%c0_29, %c0_30, %c154], %63 {strides = array<i32>} : memref<1x6x196xf32, #tpu.memory_space<vmem>>, vector<1x6x14xf32>,
    %64 = vector.extract_strided_slice %15 {offsets = [0, 192], sizes = [6, 14], strides = [1, 1]} : vector<6x256xf32> to vector<6x14xf32>
    %c0_31 = arith.constant 0 : index
    %c0_32 = arith.constant 0 : index
    %c168 = arith.constant 168 : index
    %65 = vector.load %arg4[%c0_31, %c0_32, %c168] : memref<1x6x196xf32, #tpu.memory_space<vmem>>, vector<1x6x14xf32>
    %66 = vector.shape_cast %65 : vector<1x6x14xf32> to vector<6x14xf32>
    %67 = vector.shape_cast %64 : vector<6x14xf32> to vector<1x6x14xf32>
    tpu.vector_store %arg4[%c0_31, %c0_32, %c168], %67 {strides = array<i32>} : memref<1x6x196xf32, #tpu.memory_space<vmem>>, vector<1x6x14xf32>,
    %68 = vector.extract_strided_slice %15 {offsets = [0, 208], sizes = [6, 14], strides = [1, 1]} : vector<6x256xf32> to vector<6x14xf32>
    %c0_33 = arith.constant 0 : index
    %c0_34 = arith.constant 0 : index
    %c182 = arith.constant 182 : index
    %69 = vector.load %arg4[%c0_33, %c0_34, %c182] : memref<1x6x196xf32, #tpu.memory_space<vmem>>, vector<1x6x14xf32>
    %70 = vector.shape_cast %69 : vector<1x6x14xf32> to vector<6x14xf32>
    %71 = vector.shape_cast %68 : vector<6x14xf32> to vector<1x6x14xf32>
    tpu.vector_store %arg4[%c0_33, %c0_34, %c182], %71 {strides = array<i32>} : memref<1x6x196xf32, #tpu.memory_space<vmem>>, vector<1x6x14xf32>,
    return
  }
  func.func @transform_0(%arg0: i32) -> (i32, i32, i32) {
    %c0_i32 = arith.constant 0 : i32
    %c0_i32_0 = arith.constant 0 : i32
    %c0_i32_1 = arith.constant 0 : i32
    return %arg0, %c0_i32, %c0_i32_0 : i32, i32, i32
  }
  func.func @transform_1(%arg0: i32) -> (i32, i32) {
    %c0_i32 = arith.constant 0 : i32
    %c0_i32_0 = arith.constant 0 : i32
    %c0_i32_1 = arith.constant 0 : i32
    return %c0_i32, %c0_i32_0 : i32, i32
  }
  func.func @transform_2(%arg0: i32) -> (i32, i32) {
    %c0_i32 = arith.constant 0 : i32
    %c0_i32_0 = arith.constant 0 : i32
    %c0_i32_1 = arith.constant 0 : i32
    return %c0_i32, %c0_i32_0 : i32, i32
  }
  func.func @transform_3(%arg0: i32) -> (i32, i32, i32) {
    %c0_i32 = arith.constant 0 : i32
    %c0_i32_0 = arith.constant 0 : i32
    %c0_i32_1 = arith.constant 0 : i32
    return %arg0, %c0_i32, %c0_i32_0 : i32, i32, i32
  }
}

</mosaic_0001>

<bundles_post_ra>
// kernel: tpu_custom_call.1
= control target key start
LH: loop header
LB: loop body
LE: loop exit
PB: predicated region body
PF: predicated region fallthrough
CT: control target
= control target key end

     0   :  { %s649_s12 = smov 0   ;;  %s743_s0 = inlined_call_operand.vmem [shape: f32[2,3,256], index: 0, kind: input, shape index: {}]   ;;  %s744_s1 = inlined_call_operand.vmem [shape: f32[6,27], index: 1, kind: input, shape index: {}]   ;;  %s745_s2 = inlined_call_operand.vmem [shape: f32[6,1], index: 2, kind: input, shape index: {}]   ;;  %s746_s3 = inlined_call_operand.vmem [shape: f32[2,6,196], index: 3, kind: output, shape index: {}]  }
   0x1 LB: > { %s522_s13 = sadd.s32 4294967295, %s608_s12   ;;  %p526_p0 = scmp.ge.s32.totalorder %s608_s12, 1  ;;  %s608_s12 = sphi %s649_s12, %s13_s12  }
   0x2   : > { %p137_p1 = scmp.lt.s32.totalorder %s608_s12, 3 }
   0x4   : > { %p138_p2 = pnand %p526_p0, %p137_p1 }
   0x5   : > { %p161_p3 = scmp.lt.s32.totalorder (!%p138_p2), %s522_s13, 1  ;;  %s610_s18 = smov (!%p138_p2), 126  }
   0x6   : > { %141 = sbr.rel (%p138_p2) target bundleno = 480 (0x1e0), region = 32  ;;  %s611_s19 = smov (!%p138_p2), 112  }
   0x7   : > { %s612_s20 = smov (!%p138_p2), 111   ;;  %s613_s21 = smov (!%p138_p2), 110  }
   0x8   : > { %s614_s22 = smov (!%p138_p2), 96   ;;  %s615_s23 = smov (!%p138_p2), 95  }
   0x9   : > { %s616_s24 = smov (!%p138_p2), 94   ;;  %s617_s25 = smov (!%p138_p2), 127  }
   0xa   : > { %s619_s7 = smov (!%p138_p2), 118   ;;  %s620_s8 = smov (!%p138_p2), 124  }
   0xb   : > { %s748_s13 = smov (!%p161_p3, %s522_s13), 1  ;;  %v182_v25 = vlaneseq  ;;  %v340_v27 = vld [vmem:[%s745_s2] sm:$0x3f]  ;;  %v618_v29 = vmov 0   ;;  %vm318_vm7 = vcmask 1042432   ;;  %vm324_vm8 = vcmask 1040384  }
   0xc   : > { %s537_s14 = sshll.u32 %s748_s13, 3  ;;  %601 = vset.pattern.permute.xlu0 %v618_v29  ;;  %vm333_vm9 = vcmask 1041408   ;;  %vm327_vm10 = vcmask 1043456   ;;  %vm336_vm12 = vcmask 1044480   ;;  %vm330_vm13 = vcmask 1046528   ;;  %s538_s30 = sshll.u32 %s748_s13, 4 }
   0xd   : > { %s165_s17 = scalar_lea.vmem %s743_s0, %s537_s14  ;;  %v669_v30 = vand.u32 127, %v182_v25  ;;  %vm321_vm14 = vcmask 1045504   ;;  %vm346_vm15 = vcmask 220160   ;;  %s720_s6 = scalar_lea.vmem %s746_s3, %s538_s30 }
   0xe   : > { %v171_v0 = vld [vmem:[%s165_s17] sm:$0x77]  ;;  %s621_s9 = smov 108   ;;  %s622_s10 = smov 120  }
   0xf   : > { %173 = vst [vmem:[#allocation1] ss:$2 sm:$0xff] %v171_v0  ;;  %vm220_vm0 = vcmp.lt.s32.totalorder %v669_v30, 111  ;;  %vm196_vm1 = vcmp.lt.s32.totalorder %v669_v30, 126  ;;  %vm232_vm2 = vcmp.lt.s32.totalorder %v669_v30, 110  ;;  %vm208_vm3 = vcmp.lt.s32.totalorder %v669_v30, 112 }
  0x10   : > { %vm184_vm4 = vcmp.lt.s32.totalorder %v669_v30, 127  ;;  %vm244_vm5 = vcmp.lt.s32.totalorder %v669_v30, 96  ;;  %vm256_vm6 = vcmp.lt.s32.totalorder %v669_v30, 95  ;;  %vm268_vm11 = vcmp.lt.s32.totalorder %v669_v30, 94  ;;  %s623_s11 = smov 122   ;;  %s624_s13 = smov 116  }
  0x11   : > { %s625_s14 = smov 106   ;;  %s626_s15 = smov 114  }
  0x12   : > { %s627_s16 = smov 102   ;;  %s628_s17 = smov 104  }
  0x16   : > { %v174_v1 = vld.sshfl [vmem:[#allocation1] sm:$0xff pattern:$0x75316420]  ;;  %v175_v2 = vld.sshfl [vmem:[#allocation1 + $0x8] sm:$0xff pattern:$0x75316420] }
  0x17   : > { %187 = vst [vmem:[#allocation1] ss:$2 sm:$0xff] %v171_v0  ;;  %v596_v21 = vpack.i.bf16 %v175_v2, %v174_v1 }
  0x1e   : > { %v188_v3 = vld.sshfl [vmem:[#allocation1] sm:$0xff pattern:$0x75316420]  ;;  %v189_v4 = vld.sshfl [vmem:[#allocation1 + $0x8] sm:$0xff pattern:$0x75316420] }
  0x1f   : > { %v566_v5 = vpack.i.bf16 %v189_v4, %v188_v3  ;;  %199 = vst [vmem:[#allocation1] ss:$2 sm:$0xff] %v171_v0 }
  0x21   : > { %567 = vrot.lane.b32.xlu1 %v566_v5, %s610_s18 }
  0x26   : > { %v200_v6 = vld.sshfl [vmem:[#allocation1] sm:$0xff pattern:$0x75316420]  ;;  %v201_v7 = vld.sshfl [vmem:[#allocation1 + $0x8] sm:$0xff pattern:$0x75316420] }
  0x27   : > { %211 = vst [vmem:[#allocation1] ss:$2 sm:$0xff] %v171_v0  ;;  %v571_v8 = vpack.i.bf16 %v201_v7, %v200_v6 }
  0x29   : > { %572 = vrot.lane.b32.xlu1 %v571_v8, %s611_s19 }
  0x2e   : > { %v212_v9 = vld.sshfl [vmem:[#allocation1] sm:$0xff pattern:$0x75316420]  ;;  %v213_v10 = vld.sshfl [vmem:[#allocation1 + $0x8] sm:$0xff pattern:$0x75316420] }
  0x2f   : > { %223 = vst [vmem:[#allocation1] ss:$2 sm:$0xff] %v171_v0  ;;  %v576_v11 = vpack.i.bf16 %v213_v10, %v212_v9 }
  0x31   : > { %577 = vrot.lane.b32.xlu2 %v576_v11, %s612_s20 }
  0x36   : > { %v224_v12 = vld.sshfl [vmem:[#allocation1] sm:$0xff pattern:$0x75316420]  ;;  %v225_v13 = vld.sshfl [vmem:[#allocation1 + $0x8] sm:$0xff pattern:$0x75316420] }
  0x37   : > { %v581_v14 = vpack.i.bf16 %v225_v13, %v224_v12  ;;  %235 = vst [vmem:[#allocation1] ss:$2 sm:$0xff] %v171_v0 }
  0x39   : > { %582 = vrot.lane.b32.xlu0 %v581_v14, %s613_s21 }
  0x3e   : > { %v236_v15 = vld.sshfl [vmem:[#allocation1] sm:$0xff pattern:$0x75316420]  ;;  %v237_v16 = vld.sshfl [vmem:[#allocation1 + $0x8] sm:$0xff pattern:$0x75316420] }
  0x3f   : > { %v586_v17 = vpack.i.bf16 %v237_v16, %v236_v15  ;;  %247 = vst [vmem:[#allocation1] ss:$2 sm:$0xff] %v171_v0 }
  0x41   : > { %587 = vrot.lane.b32.xlu0 %v586_v17, %s614_s22 }
  0x46   : > { %v248_v18 = vld.sshfl [vmem:[#allocation1] sm:$0xff pattern:$0x75316420]  ;;  %v249_v19 = vld.sshfl [vmem:[#allocation1 + $0x8] sm:$0xff pattern:$0x75316420] }
  0x47   : > { %v591_v20 = vpack.i.bf16 %v249_v19, %v248_v18  ;;  %259 = vst [vmem:[#allocation1] ss:$2 sm:$0xff] %v171_v0 }
  0x49   : > { %592 = vrot.lane.b32.xlu2 %v591_v20, %s615_s23 }
  0x4e   : > { %v261_v22 = vld.sshfl [vmem:[#allocation1 + $0x8] sm:$0xff pattern:$0x75316420]  ;;  %v260_v23 = vld.sshfl [vmem:[#allocation1] sm:$0xff pattern:$0x75316420] }
  0x4f   : > { %266 = vrot.lane.b32.xlu1 %v261_v22, %s616_s24  ;;  %264 = vrot.lane.b32.xlu0 %v260_v23, %s616_s24  ;;  %271 = vst [vmem:[#allocation1] ss:$2 sm:$0xff] %v171_v0 }
  0x51   : > { %597 = vrot.lane.b32.xlu2 %v596_v21, %s617_s25 }
  0x56   : > { %v272_v21 = vld.sshfl [vmem:[#allocation1] sm:$0xff pattern:$0x75316420]  ;;  %v273_v22 = vld.sshfl [vmem:[#allocation1 + $0x8] sm:$0xff pattern:$0x75316420] }
  0x57   : > { %343 = vperm.xlu0 %601, %v340_v27  }
  0x8b   : > { %v578_v24 = vpop.permute.xlu2 %577 }
  0x8c   : > { %v580_v32 = vunpack.i.h.bf16 %v578_v24  ;;  %v579_v33 = vunpack.i.l.bf16 %v578_v24 }
  0x8e   : > { %v672_v35 = vsel %vm220_vm0, %v579_v33, %v580_v32  ;;  %v674_v39 = vsel %vm220_vm0, %v580_v32, %v579_v33  ;;  %vm396_vm0 = vcmask 111616  }
  0x8f   : > { %v296_v42 = vrot.slane %v672_v35, 4  ;;  %v297_v45 = vrot.slane %v674_v39, 4 }
  0x93   : > { %v568_v26 = vpop.permute.xlu1 %567 }
  0x94   : > { %v570_v36 = vunpack.i.h.bf16 %v568_v26  ;;  %v569_v37 = vunpack.i.l.bf16 %v568_v26 }
  0x96   : > { %v681_v46 = vsel %vm196_vm1, %v569_v37, %v570_v36  ;;  %v685_v48 = vsel %vm196_vm1, %v570_v36, %v569_v37  ;;  %vm402_vm1 = vcmask 226416  }
  0x97   : > { %v284_v59 = vrot.slane %v681_v46, 2  ;;  %v285_v60 = vrot.slane %v685_v48, 2 }
  0x9b   : > { %v573_v34 = vpop.permute.xlu1 %572 }
  0x9c   : > { %v575_v40 = vunpack.i.h.bf16 %v573_v34  ;;  %v574_v41 = vunpack.i.l.bf16 %v573_v34 }
  0x9e   : > { %v209_v53 = vsel %vm208_vm3, %v574_v41, %v575_v40  ;;  %v210_v54 = vsel %vm208_vm3, %v575_v40, %v574_v41  ;;  %vm412_vm3 = vcmask 456016  }
  0x9f   : > { %v290_v63 = vrot.slane %v209_v53, 7  ;;  %v291_v0 = vrot.slane %v210_v54, 7 }
  0xa1   : > { %v325_v11 = vsel %vm324_vm8, %v284_v59, %v290_v63  ;;  %v326_v12 = vsel %vm324_vm8, %v285_v60, %v291_v0  ;;  %vm450_vm8 = vcmask 210016  }
  0xa2   : > { %v328_v23 = vsel %vm327_vm10, %v325_v11, %v296_v42  ;;  %v329_v24 = vsel %vm327_vm10, %v326_v12, %v297_v45  ;;  %vm432_vm10 = vcmask 915216  }
  0xa3   : > { %v593_v31 = vpop.permute.xlu2 %592 }
  0xa4   : > { %v595_v51 = vunpack.i.h.bf16 %v593_v31  ;;  %v594_v52 = vunpack.i.l.bf16 %v593_v31  ;;  %v339_v31 = vld [vmem:[%s744_s1] sm:$0x3f] }
  0xa6   : > { %v257_v3 = vsel %vm256_vm6, %v594_v52, %v595_v51  ;;  %v258_v4 = vsel %vm256_vm6, %v595_v51, %v594_v52  ;;  %vm427_vm6 = vcmask 800416  }
  0xa7   : > { %v314_v9 = vrot.slane %v257_v3, 3  ;;  %v315_v10 = vrot.slane %v258_v4, 3 }
  0xab   : > { %v583_v28 = vpop.permute.xlu0 %582  ;;  %v598_v47 = vpop.permute.xlu2 %597 }
  0xac   : > { %v585_v49 = vunpack.i.h.bf16 %v583_v28  ;;  %v584_v50 = vunpack.i.l.bf16 %v583_v28  ;;  %v600_v55 = vunpack.i.h.bf16 %v598_v47  ;;  %v599_v56 = vunpack.i.l.bf16 %v598_v47 }
  0xae   : > { %v233_v61 = vsel %vm232_vm2, %v584_v50, %v585_v49  ;;  %v234_v62 = vsel %vm232_vm2, %v585_v49, %v584_v50  ;;  %v185_v5 = vsel %vm184_vm4, %v599_v56, %v600_v55  ;;  %v186_v6 = vsel %vm184_vm4, %v600_v55, %v599_v56 }
  0xaf   : > { %v302_v7 = vrot.slane %v233_v61, 1  ;;  %v303_v8 = vrot.slane %v234_v62, 1  ;;  %v278_v13 = vrot.slane %v185_v5, 5  ;;  %v279_v14 = vrot.slane %v186_v6, 5 }
  0xb0   : > { %vm407_vm2 = vcmask 341216   ;;  %vm417_vm4 = vcmask 570816  }
  0xb1   : > { %v319_v27 = vsel %vm318_vm7, %v272_v21, %v278_v13  ;;  %v320_v28 = vsel %vm318_vm7, %v273_v22, %v279_v14  ;;  %v331_v29 = vsel %vm330_vm13, %v328_v23, %v302_v7  ;;  %v332_v30 = vsel %vm330_vm13, %v329_v24, %v303_v8 }
  0xb2   : > { %v322_v32 = vsel %vm321_vm14, %v319_v27, %v284_v59  ;;  %v323_v33 = vsel %vm321_vm14, %v320_v28, %v285_v60  ;;  %vm460_vm13 = vcmask 439616   ;;  %vm465_vm14 = vcmask 554416  }
  0xb3   : > { %v588_v38 = vpop.permute.xlu0 %587 }
  0xb4   : > { %v590_v43 = vunpack.i.h.bf16 %v588_v38  ;;  %v589_v44 = vunpack.i.l.bf16 %v588_v38 }
  0xb6   : > { %v245_v57 = vsel %vm244_vm5, %v589_v44, %v590_v43  ;;  %v246_v58 = vsel %vm244_vm5, %v590_v43, %v589_v44  ;;  %vm422_vm5 = vcmask 685616  }
  0xb7   : > { %v308_v1 = vrot.slane %v245_v57, 6  ;;  %v309_v2 = vrot.slane %v246_v58, 6 }
  0xb9   : > { %v334_v17 = vsel %vm333_vm9, %v302_v7, %v308_v1  ;;  %v335_v18 = vsel %vm333_vm9, %v303_v8, %v309_v2  ;;  %vm455_vm9 = vcmask 324816  }
  0xba   : > { %v337_v25 = vsel %vm336_vm12, %v334_v17, %v314_v9  ;;  %v338_v26 = vsel %vm336_vm12, %v335_v18, %v315_v10  ;;  %vm443_vm12 = vcmask 1046512  }
  0xc1   : > { %v267_v15 = vpop.permute.xlu1 %266  ;;  %v265_v16 = vpop.permute.xlu0 %264 }
  0xc2   : > { %v269_v19 = vsel %vm268_vm11, %v265_v16, %v267_v15  ;;  %v270_v20 = vsel %vm268_vm11, %v267_v15, %v265_v16  ;;  %vm438_vm11 = vcmask 1030016  }
  0xc3   : > { %531 = vmatpush.msk.msra.mxu0 %vm318_vm7, %v269_v19  ;;  %533 = vmatpush.msk.msra.mxu1 %vm318_vm7, %v270_v20  ;;  %vm445_vm7 = vcmask 95232  }
  0xc5   : > { %369 = vmatpush.msra.mxu0 %v337_v25  ;;  %389 = vmatpush.msra.mxu1 %v338_v26 }
  0xc7   : > { %370 = vmatpush.msra.mxu0 %v331_v29  ;;  %390 = vmatpush.msra.mxu1 %v332_v30 }
  0xc9   : > { %371 = vmatpush.msra.mxu0 %v322_v32  ;;  %391 = vmatpush.msra.mxu1 %v323_v33  ;;  %v344_v34 = vpop.permute.xlu0 %343 }
  0xca   : > { %532 = vmatmul.msk.f32.vlgmr.msra.gmra.mxu0 %vm346_vm15, %v339_v31  ;;  %534 = vmatmul.msk.f32.vlgmr.msra.gmra.mxu1 %vm346_vm15, %v339_v31 }
 0x147   : > { %v373_v35 = vpop.f32.mrf.mxu0  ;;  %v393_v37 = vpop.f32.mrf.mxu1 }
 0x148   : > { %v374_v36 = vadd.f32 %v373_v35, %v344_v34  ;;  %v394_v38 = vadd.f32 %v393_v37, %v344_v34 }
 0x14a   : > { %419 = vrot.lane.b32.xlu0 %v374_v36, %s619_s7  ;;  %404 = vrot.lane.b32.xlu2 %v374_v36, %s620_s8  ;;  %397 = vst.msk [vmem:[%s720_s6] sm:$0x3f] %vm396_vm0, %v374_v36 }
 0x14b   : > { %399 = vrot.lane.b32.xlu1 %v374_v36, %s610_s18 }
 0x152   : > { %447 = vrot.lane.b32.xlu0 %v394_v38, %s621_s9  ;;  %414 = vrot.lane.b32.xlu2 %v374_v36, %s622_s10 }
 0x153   : > { %409 = vrot.lane.b32.xlu1 %v374_v36, %s623_s11 }
 0x15a   : > { %435 = vrot.lane.b32.xlu0 %v394_v38, %s611_s19  ;;  %424 = vrot.lane.b32.xlu2 %v374_v36, %s624_s13 }
 0x15b   : > { %440 = vrot.lane.b32.xlu1 %v394_v38, %s613_s21 }
 0x162   : > { %452 = vrot.lane.b32.xlu2 %v394_v38, %s625_s14 }
 0x163   : > { %429 = vrot.lane.b32.xlu1 %v374_v36, %s626_s15 }
 0x16a   : > { %462 = vrot.lane.b32.xlu2 %v394_v38, %s627_s16 }
 0x16b   : > { %457 = vrot.lane.b32.xlu1 %v394_v38, %s628_s17 }
 0x1a4   : > { %v405_v39 = vpop.permute.xlu2 %404 }
 0x1ac   : > { %v415_v40 = vpop.permute.xlu2 %414 }
 0x1b4   : > { %v425_v43 = vpop.permute.xlu2 %424 }
 0x1bc   : > { %v420_v42 = vpop.permute.xlu0 %419  ;;  %v453_v47 = vpop.permute.xlu2 %452 }
 0x1bd   : > { %v400_v41 = vpop.permute.xlu1 %399 }
 0x1be   : > { %403 = vst.msk [vmem:[%s720_s6] sm:$0x3f] %vm402_vm1, %v400_v41 }
 0x1bf   : > { %408 = vst.msk [vmem:[%s720_s6] sm:$0x3f] %vm407_vm2, %v405_v39 }
 0x1c4   : > { %v448_v45 = vpop.permute.xlu0 %447  ;;  %v463_v51 = vpop.permute.xlu2 %462 }
 0x1c5   : > { %v410_v44 = vpop.permute.xlu1 %409 }
 0x1c6   : > { %413 = vst.msk [vmem:[%s720_s6] sm:$0x3f] %vm412_vm3, %v410_v44 }
 0x1c7   : > { %418 = vst.msk [vmem:[%s720_s6] sm:$0x3f] %vm417_vm4, %v415_v40 }
 0x1c8   : > { %423 = vst.msk [vmem:[%s720_s6] sm:$0x3f] %vm422_vm5, %v420_v42 }
 0x1c9   : > { %428 = vst.msk [vmem:[%s720_s6] sm:$0x3f] %vm427_vm6, %v425_v43 }
 0x1cc   : > { %v436_v49 = vpop.permute.xlu0 %435 }
 0x1cd   : > { %v441_v46 = vpop.permute.xlu1 %440 }
 0x1ce   : > { %446 = vst.msk [vmem:[%s720_s6 + $0x8] sm:$0x3f] %vm445_vm7, %v441_v46 }
 0x1cf   : > { %451 = vst.msk [vmem:[%s720_s6 + $0x8] sm:$0x3f] %vm450_vm8, %v448_v45 }
 0x1d0   : > { %456 = vst.msk [vmem:[%s720_s6 + $0x8] sm:$0x3f] %vm455_vm9, %v453_v47 }
 0x1d5   : > { %v430_v48 = vpop.permute.xlu1 %429 }
 0x1d6   : > { %433 = vst.msk [vmem:[%s720_s6] sm:$0x3f] %vm432_vm10, %v430_v48 }
 0x1d7   : > { %439 = vst.msk [vmem:[%s720_s6] sm:$0x3f] %vm438_vm11, %v436_v49 }
 0x1d8   : > { %444 = vst.msk [vmem:[%s720_s6] sm:$0x3f] %vm443_vm12, %v441_v46 }
 0x1dd   : > { %v458_v50 = vpop.permute.xlu1 %457 }
 0x1de   : > { %461 = vst.msk [vmem:[%s720_s6 + $0x8] sm:$0x3f] %vm460_vm13, %v458_v50 }
 0x1df   : > { %466 = vst.msk [vmem:[%s720_s6 + $0x8] sm:$0x3f] %vm465_vm14, %v463_v51 }
 0x1e0 PF: > { %s13_s12 = sadd.s32 1, %s608_s12  }
 0x1e1   : > { %p10_p4 = scmp.ge.s32.totalorder %s13_s12, 4  }
 0x1e3   :  { %12 = sbr.rel (!%p10_p4) target bundleno = 1 (0x1), region = 62 }

</bundles_post_ra>
